<compile_context>
chip_gen: v6e
topology: v6e:2x2x1
jax: 0.10.0
libtpu: 0.0.40
codegen_flags: <defaults>
</compile_context>

<pallas_src>
import functools
import math

import jax
import jax.numpy as jnp
from jax.experimental import pallas as pl
from jax.experimental.pallas import tpu as pltpu


ACT_DTYPE = jnp.bfloat16      # inter-kernel activations
WEIGHT_DTYPE = jnp.bfloat16   # matmul weights
COMPUTE_DTYPE = jnp.bfloat16  # MXU input dtype (f32 accumulation)

VMEM_LIMIT = 32 * 1024 * 1024  # safe on v5e/v6e (128 MiB) and v7x (64 MiB)

TILE_M = 256
TILE_N = 512
TILE_K = 1024
MAX_RESIDENT_M = 1024                 # decode-regime M = B*T kept fully resident
MAX_RESIDENT_X_BYTES = 8 * 1024 * 1024


def _tile(dim, target, align):
    """Largest tile <= target dividing `dim`, multiple of `align`; falls back
    to the full dim (always a legal block shape)."""
    if dim <= target:
        return dim
    t = (target // align) * align
    while t >= align:
        if dim % t == 0:
            return t
        t -= align
    return dim


# ----------------------------- Pallas kernels ------------------------------

def _gelu_erf(x):
    # Exact (erf-based) nn.GELU(); erf via Abramowitz & Stegun 7.1.26
    # (|abs err| < 1.5e-7) since an erf primitive is not guaranteed in Mosaic.
    # TODO(synk): if the GELU epilogue shows VALU saturation on v5e, switch to
    # the tanh form so the transcendental rides the EUP slot.
    z = x * jnp.float32(1.0 / math.sqrt(2.0))
    az = jnp.abs(z)
    t = 1.0 / (1.0 + 0.3275911 * az)
    poly = t * (0.254829592 + t * (-0.284496736 + t * (1.421413741
             + t * (-1.453152027 + t * 1.061405429))))
    erf_abs = 1.0 - poly * jnp.exp(-az * az)
    erf = jnp.where(z >= 0.0, erf_abs, -erf_abs)
    return 0.5 * x * (1.0 + erf)


def linear_kfull_kernel(*refs, has_bias, has_residual, activation):
    # full-K block (decode regime): no k-loop, no accumulator scratch.
    it = iter(refs)
    x_ref = next(it)
    w_ref = next(it)
    b_ref = next(it) if has_bias else None
    r_ref = next(it) if has_residual else None
    o_ref = next(it)

    acc = jnp.dot(x_ref[...].astype(COMPUTE_DTYPE),
                  w_ref[...].astype(COMPUTE_DTYPE),
                  preferred_element_type=jnp.float32)
    if has_bias:
        acc = acc + b_ref[...].astype(jnp.float32)
    if activation == "gelu":
        acc = _gelu_erf(acc)
    if has_residual:
        acc = acc + r_ref[...].astype(jnp.float32)
    o_ref[...] = acc.astype(o_ref.dtype)


def linear_ktiled_kernel(*refs, nk, has_bias, has_residual, activation):
    # general K-tiled path with f32 VMEM accumulator (large-M / training regime).
    it = iter(refs)
    x_ref = next(it)
    w_ref = next(it)
    b_ref = next(it) if has_bias else None
    r_ref = next(it) if has_residual else None
    o_ref = next(it)
    acc_ref = next(it)

    k = pl.program_id(2)

    @pl.when(k == 0)
    def _():
        acc_ref[...] = jnp.zeros_like(acc_ref)

    acc_ref[...] += jnp.dot(x_ref[...].astype(COMPUTE_DTYPE),
                            w_ref[...].astype(COMPUTE_DTYPE),
                            preferred_element_type=jnp.float32)

    @pl.when(k == nk - 1)
    def _():
        r = acc_ref[...]
        if has_bias:
            r = r + b_ref[...].astype(jnp.float32)
        if activation == "gelu":
            r = _gelu_erf(r)
        if has_residual:
            r = r + r_ref[...].astype(jnp.float32)
        o_ref[...] = r.astype(o_ref.dtype)


def layernorm_kernel(x_ref, g_ref, b_ref, o_ref):
    x = x_ref[...].astype(jnp.float32)
    mu = jnp.mean(x, axis=-1, keepdims=True)
    var = jnp.mean(jnp.square(x - mu), axis=-1, keepdims=True)
    y = (x - mu) * jax.lax.rsqrt(var + 1e-5)
    o_ref[...] = (y * g_ref[...] + b_ref[...]).astype(o_ref.dtype)


def flash_attention_kernel(q_ref, k_ref, v_ref, o_ref, m_sc, l_sc, acc_sc,
                           *, n_head, causal, tq, tkv):
    # q_ref: (tq, D); k_ref/v_ref: (tkv, D); o_ref: (tq, D)
    # scratch: m/l (n_head, tq, 1) f32, acc (n_head, tq, dh) f32
    kv_i = pl.program_id(2)
    nkv = pl.num_programs(2)
    q_i = pl.program_id(1)

    D = q_ref.shape[-1]
    dh = D // n_head
    scale = jnp.float32(dh ** -0.5)  # folds Whisper's q*dh^-0.25 and k*dh^-0.25

    @pl.when(kv_i == 0)
    def _():
        m_sc[...] = jnp.full_like(m_sc, -1e30)
        l_sc[...] = jnp.zeros_like(l_sc)
        acc_sc[...] = jnp.zeros_like(acc_sc)

    def compute_tile():
        if causal:
            row = q_i * tq + jax.lax.broadcasted_iota(jnp.int32, (tq, tkv), 0)
            col = kv_i * tkv + jax.lax.broadcasted_iota(jnp.int32, (tq, tkv), 1)
            valid = col <= row
        # TODO(synk): for dh=64 on v6e/v7x, process 2 heads per 128-lane group
        # (batched dot) to lift MXU utilization above 25%.
        for h in range(n_head):  # static, unrolled
            lo = h * dh
            q = q_ref[:, lo:lo + dh].astype(COMPUTE_DTYPE)
            kk = k_ref[:, lo:lo + dh].astype(COMPUTE_DTYPE)
            v = v_ref[:, lo:lo + dh].astype(COMPUTE_DTYPE)
            s = jax.lax.dot_general(q, kk, (((1,), (1,)), ((), ())),
                                    preferred_element_type=jnp.float32) * scale
            if causal:
                s = jnp.where(valid, s, jnp.float32(-1e30))
            m_prev = m_sc[h]
            m_new = jnp.maximum(m_prev, jnp.max(s, axis=-1, keepdims=True))
            alpha = jnp.exp(m_prev - m_new)
            p = jnp.exp(s - m_new)
            if causal:
                p = jnp.where(valid, p, jnp.float32(0.0))
            l_sc[h] = alpha * l_sc[h] + jnp.sum(p, axis=-1, keepdims=True)
            acc_sc[h] = alpha * acc_sc[h] + jnp.dot(
                p.astype(COMPUTE_DTYPE), v, preferred_element_type=jnp.float32)
            m_sc[h] = m_new

    if causal:
        # skip kv tiles entirely above the diagonal
        pl.when(kv_i * tkv <= q_i * tq + (tq - 1))(compute_tile)
    else:
        compute_tile()

    @pl.when(kv_i == nkv - 1)
    def _():
        outs = []
        for h in range(n_head):
            inv = pl.reciprocal(l_sc[h], approx=True)   # approx ok for inference
            outs.append(acc_sc[h] * inv)
        # single lane-dense store of the full (tq, D) slab
        o_ref[...] = jnp.concatenate(outs, axis=-1).astype(o_ref.dtype)


# ------------------------------ wrappers ------------------------------------

def pallas_linear(x2d, w, b=None, *, residual=None, activation=None,
                  out_dtype=ACT_DTYPE):
    """out = act(x @ w [+ b]) [+ residual]; w is (K, N)."""
    M, K = x2d.shape
    Kw, N = w.shape
    assert Kw == K

    x_bytes = M * K * x2d.dtype.itemsize
    if M <= MAX_RESIDENT_M and x_bytes <= MAX_RESIDENT_X_BYTES:
        tm, tk = M, K                      # decode regime: x stays resident
    else:
        tm = _tile(M, TILE_M, 8)
        tk = _tile(K, TILE_K, 128)
    tn = _tile(N, TILE_N, 128)
    gm, gn, gk = M // tm, N // tn, K // tk

    args = [x2d, w]

    if gk == 1:
        in_specs = [pl.BlockSpec((tm, tk), lambda i, j: (i, 0)),
                    pl.BlockSpec((tk, tn), lambda i, j: (0, j))]
        if b is not None:
            in_specs.append(pl.BlockSpec((1, tn), lambda i, j: (0, j)))
            args.append(b.reshape(1, N))
        if residual is not None:
            in_specs.append(pl.BlockSpec((tm, tn), lambda i, j: (i, j)))
            args.append(residual)
        kern = functools.partial(linear_kfull_kernel, has_bias=b is not None,
                                 has_residual=residual is not None,
                                 activation=activation)
        return pl.pallas_call(
            kern,
            out_shape=jax.ShapeDtypeStruct((M, N), out_dtype),
            grid=(gm, gn),
            in_specs=in_specs,
            out_specs=pl.BlockSpec((tm, tn), lambda i, j: (i, j)),
            compiler_params=pltpu.CompilerParams(
                dimension_semantics=("parallel", "parallel"),
                vmem_limit_bytes=VMEM_LIMIT),
        )(*args)

    in_specs = [pl.BlockSpec((tm, tk), lambda i, j, k: (i, k)),
                pl.BlockSpec((tk, tn), lambda i, j, k: (k, j))]
    if b is not None:
        in_specs.append(pl.BlockSpec((1, tn), lambda i, j, k: (0, j)))
        args.append(b.reshape(1, N))
    if residual is not None:
        in_specs.append(pl.BlockSpec((tm, tn), lambda i, j, k: (i, j)))
        args.append(residual)
    kern = functools.partial(linear_ktiled_kernel, nk=gk, has_bias=b is not None,
                             has_residual=residual is not None,
                             activation=activation)
    return pl.pallas_call(
        kern,
        out_shape=jax.ShapeDtypeStruct((M, N), out_dtype),
        grid=(gm, gn, gk),
        in_specs=in_specs,
        out_specs=pl.BlockSpec((tm, tn), lambda i, j, k: (i, j)),
        scratch_shapes=[pltpu.VMEM((tm, tn), jnp.float32)],
        compiler_params=pltpu.CompilerParams(
            dimension_semantics=("parallel", "parallel", "arbitrary"),
            vmem_limit_bytes=VMEM_LIMIT),
    )(*args)


def pallas_layernorm(x2d, gamma, beta, out_dtype=ACT_DTYPE):
    M, D = x2d.shape
    tm = M if M <= MAX_RESIDENT_M else _tile(M, TILE_M, 8)
    return pl.pallas_call(
        layernorm_kernel,
        out_shape=jax.ShapeDtypeStruct((M, D), out_dtype),
        grid=(M // tm,),
        in_specs=[
            pl.BlockSpec((tm, D), lambda i: (i, 0)),
            pl.BlockSpec((1, D), lambda i: (0, 0)),
            pl.BlockSpec((1, D), lambda i: (0, 0)),
        ],
        out_specs=pl.BlockSpec((tm, D), lambda i: (i, 0)),
        compiler_params=pltpu.CompilerParams(
            dimension_semantics=("parallel",),
            vmem_limit_bytes=VMEM_LIMIT),
    )(x2d, gamma.reshape(1, D), beta.reshape(1, D))


def pallas_attention(q, k, v, n_head, *, causal):
    # q: (B, T, D), k/v: (B, S, D) -> (B, T, D); flash-style over S tiles.
    B, T, D = q.shape
    S = k.shape[1]
    assert D % n_head == 0
    dh = D // n_head
    tq = _tile(T, 128, 8)
    tkv = _tile(S, 512, 8)
    gq, gkv = T // tq, S // tkv
    kern = functools.partial(flash_attention_kernel, n_head=n_head,
                             causal=causal, tq=tq, tkv=tkv)
    return pl.pallas_call(
        kern,
        out_shape=jax.ShapeDtypeStruct((B, T, D), ACT_DTYPE),
        grid=(B, gq, gkv),
        in_specs=[
            pl.BlockSpec((None, tq, D), lambda b, qi, ki: (b, qi, 0)),
            pl.BlockSpec((None, tkv, D), lambda b, qi, ki: (b, ki, 0)),
            pl.BlockSpec((None, tkv, D), lambda b, qi, ki: (b, ki, 0)),
        ],
        out_specs=pl.BlockSpec((None, tq, D), lambda b, qi, ki: (b, qi, 0)),
        scratch_shapes=[
            pltpu.VMEM((n_head, tq, 1), jnp.float32),   # m
            pltpu.VMEM((n_head, tq, 1), jnp.float32),   # l
            pltpu.VMEM((n_head, tq, dh), jnp.float32),  # acc
        ],
        compiler_params=pltpu.CompilerParams(
            dimension_semantics=("parallel", "parallel", "arbitrary"),
            vmem_limit_bytes=VMEM_LIMIT),
    )(q, k, v)


# --------------------------- model building blocks ---------------------------

def multi_head_attention_self(x, p, n_head, residual):
    B, T, D = x.shape
    x2 = x.reshape(B * T, D)
    qkv = pallas_linear(x2, p["wqkv"], p["bqkv"])          # (B*T, 3D), fused
    q = qkv[:, :D].reshape(B, T, D)
    k = qkv[:, D:2 * D].reshape(B, T, D)
    v = qkv[:, 2 * D:].reshape(B, T, D)
    o = pallas_attention(q, k, v, n_head, causal=True)
    out = pallas_linear(o.reshape(B * T, D), p["wo"], p["bo"], residual=residual)
    return out.reshape(B, T, D)


def multi_head_attention_cross(x, xa, p, n_head, residual):
    B, T, D = x.shape
    S = xa.shape[1]
    q = pallas_linear(x.reshape(B * T, D), p["wq"], p["bq"]).reshape(B, T, D)
    kv = pallas_linear(xa.reshape(B * S, D), p["wkv"], p["bkv"])   # (B*S, 2D), fused
    k = kv[:, :D].reshape(B, S, D)
    v = kv[:, D:].reshape(B, S, D)
    o = pallas_attention(q, k, v, n_head, causal=False)
    out = pallas_linear(o.reshape(B * T, D), p["wo"], p["bo"], residual=residual)
    return out.reshape(B, T, D)


def residual_attention_block(x, xa, p, n_head):
    B, T, D = x.shape

    # self-attention (causal); residual fused into the wo epilogue
    x2 = x.reshape(B * T, D)
    h = pallas_layernorm(x2, p["attn_ln_g"], p["attn_ln_b"]).reshape(B, T, D)
    # TODO(synk): fuse the LayerNorm into the fused-QKV matmul prologue (tk==K).
    x = multi_head_attention_self(h, p["attn"], n_head, residual=x2)

    # cross-attention over audio features (no mask)
    x2 = x.reshape(B * T, D)
    h = pallas_layernorm(x2, p["xattn_ln_g"], p["xattn_ln_b"]).reshape(B, T, D)
    x = multi_head_attention_cross(h, xa, p["xattn"], n_head, residual=x2)

    # MLP: GELU fused into w1 epilogue, residual fused into w2 epilogue
    x2 = x.reshape(B * T, D)
    h = pallas_layernorm(x2, p["mlp_ln_g"], p["mlp_ln_b"])
    h = pallas_linear(h, p["w1"], p["b1"], activation="gelu")
    x = pallas_linear(h, p["w2"], p["b2"], residual=x2)
    return x.reshape(B, T, D)


def text_decoder_forward(tokens, xa, params, n_head):
    """tokens: (B, T) int32 ; xa: (B, Ta, D) ; returns logits (B, T, V) f32."""
    B, T = tokens.shape
    V, D = params["tok_emb"].shape

    # offset = 0 (kv_cache=None); embedding gather + positional add in plain JAX
    x = params["tok_emb"][tokens].astype(jnp.float32) + params["pos_emb"][:T]
    x = x.astype(ACT_DTYPE)
    xa = xa.astype(ACT_DTYPE)

    for p in params["blocks"]:
        x = residual_attention_block(x, xa, p, n_head)

    x2 = pallas_layernorm(x.reshape(B * T, D), params["ln_g"], params["ln_b"])
    # logits head: one-time pre-transposed, vocab-padded (D, V_pad) copy of
    # tok_emb -> tiles/pipelines normally, no per-tile rhs transposes.
    logits = pallas_linear(x2, params["logits_w"], out_dtype=jnp.float32)
    logits = logits[:, :V]
    return logits.reshape(B, T, V)


# --------------------------- parameter construction --------------------------

def init_params(key, n_vocab, n_ctx, d_model, n_head, n_layer):
    counter = [0]

    def nxt():
        counter[0] += 1
        return jax.random.fold_in(key, counter[0])

    def normal(shape, std=0.02, dtype=jnp.float32):
        return (std * jax.random.normal(nxt(), shape, dtype=jnp.float32)).astype(dtype)

    W = functools.partial(normal, dtype=WEIGHT_DTYPE)   # bf16 matmul weights
    D = d_model

    def self_attn_params():
        wq, wk, wv = W((D, D)), W((D, D)), W((D, D))
        bq, bv = normal((D,)), normal((D,))
        return {
            "wqkv": jnp.concatenate([wq, wk, wv], axis=1),                   # (D, 3D)
            "bqkv": jnp.concatenate([bq, jnp.zeros((D,), jnp.float32), bv]), # k: no bias
            "wo": W((D, D)), "bo": normal((D,)),
        }

    def cross_attn_params():
        wk, wv = W((D, D)), W((D, D))
        bv = normal((D,))
        return {
            "wq": W((D, D)), "bq": normal((D,)),
            "wkv": jnp.concatenate([wk, wv], axis=1),                        # (D, 2D)
            "bkv": jnp.concatenate([jnp.zeros((D,), jnp.float32), bv]),      # k: no bias
            "wo": W((D, D)), "bo": normal((D,)),
        }

    blocks = []
    for _ in range(n_layer):
        blocks.append({
            "attn": self_attn_params(),
            "attn_ln_g": jnp.ones((D,), jnp.float32),
            "attn_ln_b": jnp.zeros((D,), jnp.float32),
            "xattn": cross_attn_params(),
            "xattn_ln_g": jnp.ones((D,), jnp.float32),
            "xattn_ln_b": jnp.zeros((D,), jnp.float32),
            "w1": W((D, 4 * D)), "b1": normal((4 * D,)),
            "w2": W((4 * D, D)), "b2": normal((D,)),
            "mlp_ln_g": jnp.ones((D,), jnp.float32),
            "mlp_ln_b": jnp.zeros((D,), jnp.float32),
        })

    tok_emb = W((n_vocab, d_model))          # shared embedding / logits weights
    v_pad = ((n_vocab + 127) // 128) * 128   # pad vocab to a lane multiple
    logits_w = jnp.transpose(jnp.pad(tok_emb, ((0, v_pad - n_vocab), (0, 0))))

    return {
        "tok_emb": tok_emb,
        "logits_w": logits_w,                # (D, V_pad) bf16, one-time copy
        "pos_emb": normal((n_ctx, d_model)),
        "blocks": blocks,
        "ln_g": jnp.ones((d_model,), jnp.float32),
        "ln_b": jnp.zeros((d_model,), jnp.float32),
        # causal mask is generated in-kernel with broadcasted_iota
    }


# ----------------------------------- main ------------------------------------

if __name__ == "__main__":
    n_vocab, n_ctx, d_model, n_head, n_layer = 128, 16, 32, 4, 2
    B, T, Ta = 2, 8, 16

    key = jax.random.PRNGKey(0)
    k_tok, k_xa, k_par = jax.random.split(key, 3)

    tokens = jax.random.randint(k_tok, (B, T), 0, n_vocab, dtype=jnp.int32)
    xa = jax.random.normal(k_xa, (B, Ta, d_model), dtype=jnp.float32)

    params = init_params(k_par, n_vocab, n_ctx, d_model, n_head, n_layer)

    logits = text_decoder_forward(tokens, xa, params, n_head)
    jax.block_until_ready(logits)

    assert logits.shape == (B, T, n_vocab) and logits.dtype == jnp.float32
    assert bool(jnp.all(jnp.isfinite(logits)))
    print("KERNEL_OK")
</pallas_src>

<mosaic_0001>
module attributes {stable_mosaic.version = 11 : i64} {
  func.func @layernorm_kernel(%arg0: i32, %arg1: memref<16x32xbf16, #tpu.memory_space<vmem>>, %arg2: memref<1x32xf32, #tpu.memory_space<vmem>>, %arg3: memref<1x32xf32, #tpu.memory_space<vmem>>, %arg4: memref<16x32xbf16, #tpu.memory_space<vmem>>) attributes {dimension_semantics = [#tpu.dimension_semantics<parallel>], iteration_bounds = array<i64: 1>, scalar_prefetch = 0 : i64, scratch_operands = 0 : i64, tpu.core_type = #tpu.core_type<tc>, window_params = [{transform_indices = @transform_0, window_bounds = array<i64: 16, 32>}, {pipeline_mode = #tpu.pipeline_mode<synchronous>, transform_indices = @transform_1, window_bounds = array<i64: 1, 32>}, {pipeline_mode = #tpu.pipeline_mode<synchronous>, transform_indices = @transform_2, window_bounds = array<i64: 1, 32>}, {transform_indices = @transform_3, window_bounds = array<i64: 16, 32>}]} {
    %c0 = arith.constant 0 : index
    %c0_0 = arith.constant 0 : index
    %0 = vector.load %arg1[%c0, %c0_0] : memref<16x32xbf16, #tpu.memory_space<vmem>>, vector<16x32xbf16>
    %1 = arith.extf %0 : vector<16x32xbf16> to vector<16x32xf32>
    %cst = arith.constant dense<0.000000e+00> : vector<16xf32>
    %2 = vector.multi_reduction <add>, %1, %cst [1] : vector<16x32xf32> to vector<16xf32>
    %3 = vector.shape_cast %2 : vector<16xf32> to vector<16x1xf32>
    %cst_1 = arith.constant 3.200000e+01 : f32
    %4 = vector.broadcast %cst_1 : f32 to vector<16x1xf32>
    %5 = arith.divf %3, %4 : vector<16x1xf32>
    %6 = vector.broadcast %5 : vector<16x1xf32> to vector<16x32xf32>
    %7 = arith.subf %1, %6 : vector<16x32xf32>
    %8 = arith.mulf %7, %7 : vector<16x32xf32>
    %cst_2 = arith.constant dense<0.000000e+00> : vector<16xf32>
    %9 = vector.multi_reduction <add>, %8, %cst_2 [1] : vector<16x32xf32> to vector<16xf32>
    %10 = vector.shape_cast %9 : vector<16xf32> to vector<16x1xf32>
    %cst_3 = arith.constant 3.200000e+01 : f32
    %11 = vector.broadcast %cst_3 : f32 to vector<16x1xf32>
    %12 = arith.divf %10, %11 : vector<16x1xf32>
    %13 = vector.broadcast %5 : vector<16x1xf32> to vector<16x32xf32>
    %14 = arith.subf %1, %13 : vector<16x32xf32>
    %cst_4 = arith.constant 9.99999974E-6 : f32
    %15 = vector.broadcast %cst_4 : f32 to vector<16x1xf32>
    %16 = arith.addf %12, %15 : vector<16x1xf32>
    %17 = math.rsqrt %16 : vector<16x1xf32>
    %18 = vector.broadcast %17 : vector<16x1xf32> to vector<16x32xf32>
    %19 = arith.mulf %14, %18 : vector<16x32xf32>
    %c0_5 = arith.constant 0 : index
    %c0_6 = arith.constant 0 : index
    %20 = vector.load %arg2[%c0_5, %c0_6] : memref<1x32xf32, #tpu.memory_space<vmem>>, vector<1x32xf32>
    %21 = vector.broadcast %20 : vector<1x32xf32> to vector<16x32xf32>
    %22 = arith.mulf %19, %21 : vector<16x32xf32>
    %c0_7 = arith.constant 0 : index
    %c0_8 = arith.constant 0 : index
    %23 = vector.load %arg3[%c0_7, %c0_8] : memref<1x32xf32, #tpu.memory_space<vmem>>, vector<1x32xf32>
    %24 = vector.broadcast %23 : vector<1x32xf32> to vector<16x32xf32>
    %25 = arith.addf %22, %24 : vector<16x32xf32>
    %26 = arith.truncf %25 : vector<16x32xf32> to vector<16x32xbf16>
    %c0_9 = arith.constant 0 : index
    %c0_10 = arith.constant 0 : index
    %27 = vector.load %arg4[%c0_9, %c0_10] : memref<16x32xbf16, #tpu.memory_space<vmem>>, vector<16x32xbf16>
    tpu.vector_store %arg4[%c0_9, %c0_10], %26 {strides = array<i32>} : memref<16x32xbf16, #tpu.memory_space<vmem>>, vector<16x32xbf16>,
    return
  }
  func.func @transform_0(%arg0: i32) -> (i32, i32) {
    %c0_i32 = arith.constant 0 : i32
    %c0_i32_0 = arith.constant 0 : i32
    return %arg0, %c0_i32 : i32, i32
  }
  func.func @transform_1(%arg0: i32) -> (i32, i32) {
    %c0_i32 = arith.constant 0 : i32
    %c0_i32_0 = arith.constant 0 : i32
    %c0_i32_1 = arith.constant 0 : i32
    return %c0_i32, %c0_i32_0 : i32, i32
  }
  func.func @transform_2(%arg0: i32) -> (i32, i32) {
    %c0_i32 = arith.constant 0 : i32
    %c0_i32_0 = arith.constant 0 : i32
    %c0_i32_1 = arith.constant 0 : i32
    return %c0_i32, %c0_i32_0 : i32, i32
  }
  func.func @transform_3(%arg0: i32) -> (i32, i32) {
    %c0_i32 = arith.constant 0 : i32
    %c0_i32_0 = arith.constant 0 : i32
    return %arg0, %c0_i32 : i32, i32
  }
}

</mosaic_0001>

<bundles_post_ra>
// kernel: tpu_custom_call.1
= control target key start
LH: loop header
LB: loop body
LE: loop exit
PB: predicated region body
PF: predicated region fallthrough
CT: control target
= control target key end

     0   :  { %8 = vsyncpa [#allocation3], 0  ;;  %s215_s0 = inlined_call_operand.hbm [shape: bf16[16,32], index: 0, kind: input, shape index: {}]   ;;  %s216_s1 = inlined_call_operand.vmem [shape: f32[1,32], index: 1, kind: input, shape index: {}]   ;;  %s217_s2 = inlined_call_operand.vmem [shape: f32[1,32], index: 2, kind: input, shape index: {}]   ;;  %s218_s3 = inlined_call_operand.hbm [shape: bf16[16,32], index: 3, kind: output, shape index: {}]  }
   0x1   :  { %9 = vsyncpa [#allocation4], 0  ;;  %s169_s12 = smov [#allocation2]  }
   0x2   :  { %s15_s13 = sshll.u32 %s169_s12, 4  ;;  %s16_s13 = int_to_ptr.vmem [resolvable:$true] %s15_s13 }
   0x3   :  { %s133_s14 = scalar_lea.vmem %s16_s13, 128  ;;  %p138_p1 = scmp.lt.s32.totalorder %s16_s13, %s16_s13 }
   0x4   :  { %p134_p0 = scmp.ne.s32.totalorder %s16_s13, %s133_s14  ;;  %p139_p2 = scmp.lt.s32.totalorder %s133_s14, %s133_s14 }
   0x6   :  { %p140_p3 = por %p139_p2, %p138_p1 }
   0x8   :  { %p141_p4 = pnand %p140_p3, %p134_p0 }
   0xa   :  { %144 = shalt.err (!%p141_p4)
}
   0xb   :  { %s170_s15 = smov 64   ;;  %s171_s16 = smov 4  }
   0xc   :  { %21 = dma.hbm_to_vmem [thread:$0]  %s215_s0, 128, %s16_s13, [#allocation3], %s170_s15, %s170_s15, %s171_s16  }
   0xd   :  { %165 = dma.done.wait [#allocation3], 128  }
   0xe   :  { %166 = vsyncadd [#allocation3], 4294967168  ;;  %v114_v0 = vld [vmem:[#allocation2] sm:$0xff]   ;;  %vm33_vm0 = vcmask 261120   ;;  %vm87_vm1 = vcmask 257024   ;;  %s172_s22 = smov [#allocation5]  }
   0xf   :  { %v115_v1 = vunpack.c.l.bf16 %v114_v0  ;;  %v116_v2 = vunpack.c.h.bf16 %v114_v0  ;;  %v107_v22 = vld [vmem:[%s216_s1] ss:$0 sm:$0xff]  ;;  %s95_s23 = sshll.u32 %s172_s22, 4  ;;  %s96_s23 = int_to_ptr.vmem [resolvable:$true] %s95_s23 }
  0x10   :  { %v108_v24 = vld [vmem:[%s217_s2] ss:$0 sm:$0xff]  ;;  %s145_s1 = scalar_lea.vmem %s96_s23, 128  ;;  %p150_p6 = scmp.lt.s32.totalorder %s96_s23, %s96_s23 }
  0x11   :  { %v34_v3 = vsel %vm33_vm0, %v115_v1, 0.0  ;;  %v37_v4 = vsel %vm33_vm0, %v116_v2, 0.0  ;;  %p146_p5 = scmp.ne.s32.totalorder %s96_s23, %s145_s1  ;;  %p151_p7 = scmp.lt.s32.totalorder %s145_s1, %s145_s1 }
  0x12   :  { %35 = vadd.xlane.f32.xlu0 %v34_v3 }
  0x13   :  { %p152_p8 = por %p151_p7, %p150_p6 }
  0x15   :  { %p153_p9 = pnand %p152_p8, %p146_p5 }
  0x16   :  { %38 = vadd.xlane.f32.xlu0 %v37_v4 }
  0x9b   :  { %v36_v5 = vpop.xlane.xlu0 %35 }
  0x9c   :  { %v41_v6 = vmul.f32 0.03125, %v36_v5 }
  0x9e   :  { %v43_v7 = vsub.f32 %v115_v1, %v41_v6 }
  0x9f   :  { %v39_v8 = vpop.xlane.xlu0 %38 }
  0xa0   :  { %v42_v9 = vmul.f32 0.03125, %v39_v8  ;;  %v45_v10 = vmul.f32 %v43_v7, %v43_v7 }
  0xa2   :  { %v44_v11 = vsub.f32 %v116_v2, %v42_v9  ;;  %v47_v12 = vsel %vm33_vm0, %v45_v10, 0.0 }
  0xa3   :  { %48 = vadd.xlane.f32.xlu1 %v47_v12 }
  0xa4   :  { %v46_v13 = vmul.f32 %v44_v11, %v44_v11 }
  0xa6   :  { %v50_v14 = vsel %vm33_vm0, %v46_v13, 0.0 }
  0xa7   :  { %51 = vadd.xlane.f32.xlu1 %v50_v14 }
 0x12c   :  { %v49_v15 = vpop.xlane.xlu1 %48 }
 0x12d   :  { %v53_v16 = vmul.f32 0.03125, %v49_v15 }
 0x12f   :  { %v55_v17 = vadd.f32 1e-05, %v53_v16 }
 0x130   :  { %v52_v18 = vpop.xlane.xlu1 %51 }
 0x131   :  { %121 = vrsqrt.f32 %v55_v17  ;;  %v54_v19 = vmul.f32 0.03125, %v52_v18 }
 0x133   :  { %v56_v20 = vadd.f32 1e-05, %v54_v19 }
 0x135   :  { %123 = vrsqrt.f32 %v56_v20 }
 0x13e   :  { %v122_v21 = vpop.eup %121 }
 0x13f   :  { %v59_v23 = vmul.f32 %v122_v21, %v43_v7 }
 0x141   :  { %v68_v25 = vmul.f32 %v107_v22, %v59_v23 }
 0x142   :  { %v124_v26 = vpop.eup %123 }
 0x143   :  { %v60_v27 = vmul.f32 %v124_v26, %v44_v11  ;;  %v77_v28 = vadd.f32 %v108_v24, %v68_v25 }
 0x145   :  { %v69_v29 = vmul.f32 %v107_v22, %v60_v27  ;;  %v111_v30 = vpack.c.bf16 %v77_v28, %v77_v28 }
 0x147   :  { %v78_v31 = vadd.f32 %v108_v24, %v69_v29  ;;  %88 = vst.msk [vmem:[#allocation5] sm:$0xf] %vm87_vm1, %v111_v30 }
 0x149   :  { %v112_v32 = vpack.c.bf16 %v78_v31, %v78_v31 }
 0x14b   :  { %89 = vst.msk [vmem:[#allocation5 + $0x4] sm:$0xf] %vm87_vm1, %v112_v32 }
 0x14c   :  { %156 = shalt.err (!%p153_p9)
}
 0x14d   :  { %101 = dma.vmem_to_hbm [thread:$0]  %s96_s23, 128, %s218_s3, [#allocation4], %s170_s15, %s170_s15, %s171_s16  }
 0x14e   :  { %167 = dma.done.wait [#allocation4], 128  }
 0x14f   :  { %168 = vsyncadd [#allocation4], 4294967168 }
 0x150   :  { %105 = vsyncpa [#allocation3], 1 }
 0x151   :  { %106 = vsyncpa [#allocation4], 1 }

</bundles_post_ra>
